<compile_context>
chip_gen: v6e
topology: v6e:2x2x1
jax: 0.10.0
libtpu: 0.0.40
codegen_flags: <defaults>
</compile_context>

<pallas_src>
import functools

import jax
import jax.numpy as jnp
from jax.experimental import pallas as pl
from jax.experimental.pallas import tpu as pltpu


def _tv_kernel(x_ref, mw_ref, mh_ref, o_ref, *, W, HW, n_valid, tblk, mask_tail):
    # x block: (tblk, HW) lane-dense planes; cast in-register only.
    x = x_ref[...].astype(jnp.float32)

    if HW % 128 == 0:
        # XLU lane rotates; HW-1 == -1 (mod HW) -> x[:, (j+1) % HW],
        #                   HW-W == -W (mod HW) -> x[:, (j+W) % HW].
        xw = pltpu.roll(x, shift=HW - 1, axis=1)
        xh = pltpu.roll(x, shift=HW - W, axis=1)
    else:
        # TODO(synk): pltpu.roll on a non-128-multiple lane axis; fall back to
        # concatenate shifts (correct, slower) for odd plane sizes.
        xw = jnp.concatenate([x[:, 1:], x[:, :1]], axis=1)
        xh = jnp.concatenate([x[:, W:], x[:, :W]], axis=1)

    dw = xw - x
    dh = xh - x

    # Masks are precomputed in the wrapper and already folded with
    # weight * 2 / (batch * count_*): seam (wrap) positions are zero, so the
    # rolled wrap terms vanish.  Per element: 2 subs, 2 squares, 2 muls, 1 add.
    contrib = mw_ref[...] * (dw * dw) + mh_ref[...] * (dh * dh)

    if mask_tail:
        # Ragged last block: rows beyond the real plane count hold undefined
        # data; zero them (select, so inf/nan garbage cannot leak through).
        row = pl.program_id(0) * tblk + jax.lax.broadcasted_iota(
            jnp.int32, (tblk, 1), 0)
        contrib = jnp.where(row < n_valid, contrib, 0.0)

    # One full reduce per block (vreg adds + a single XLU intra-vreg reduce),
    # written as a lane-dense partial so the grid axis can stay "parallel".
    s = jnp.sum(contrib)
    o_ref[...] = jnp.full(o_ref.shape, s, dtype=jnp.float32)


def tv_loss(x, tv_loss_weight=1.0):
    B, C, H, W = x.shape
    HW = H * W
    N = B * C
    count_h = C * (H - 1) * W   # tensor_size(x[:, :, 1:, :])
    count_w = C * H * (W - 1)   # tensor_size(x[:, :, :, 1:])

    # Lane-dense layout: each plane becomes one contiguous row of length H*W.
    xr = x.reshape(N, HW)

    # Precomputed, pre-scaled seam masks (built once; trivial XLA ops).
    # mask_w: not-last-column; mask_h: not-last-row.  Scaled so the kernel's
    # partial sums already include weight * 2 / (batch * count_*).
    j = jnp.arange(HW, dtype=jnp.int32)
    scale = jnp.float32(2.0 * float(tv_loss_weight) / float(B))
    mask_w = (((j % W) < (W - 1)).astype(jnp.float32)
              * (scale / jnp.float32(count_w))).reshape(1, HW)
    mask_h = ((j < (H - 1) * W).astype(jnp.float32)
              * (scale / jnp.float32(count_h))).reshape(1, HW)

    # Planes per block: ~2 MiB input blocks, sublane-aligned.  No HBM padding;
    # a ragged tail block is masked in-kernel instead.
    # TODO(synk): very large planes (>~2 MiB each, e.g. 4K images) would need
    # row-tiling with a 1-row halo instead of whole-plane rows.
    target_bytes = 2 * 1024 * 1024
    bytes_per_plane = max(1, HW * xr.dtype.itemsize)
    planes_per_target = max(8, (int(target_bytes // bytes_per_plane) // 8) * 8)
    tblk = N if N <= planes_per_target else planes_per_target
    grid = (pl.cdiv(N, tblk),)
    mask_tail = (N % tblk) != 0

    kernel = functools.partial(
        _tv_kernel, W=W, HW=HW, n_valid=N, tblk=tblk, mask_tail=mask_tail)

    # Explicit scoped-VMEM budget: double-buffered input block + generous
    # headroom for f32 elementwise temporaries the compiler may materialize.
    hw_pad = ((HW + 127) // 128) * 128
    t_pad = ((tblk + 7) // 8) * 8
    in_block_bytes = t_pad * hw_pad * xr.dtype.itemsize
    f32_block_bytes = t_pad * hw_pad * 4
    vmem_limit = max(32 << 20, 2 * in_block_bytes + 8 * f32_block_bytes + (8 << 20))
    vmem_limit = min(int(vmem_limit), 100 << 20)

    partials = pl.pallas_call(
        kernel,
        out_shape=jax.ShapeDtypeStruct((grid[0], 8, 128), jnp.float32),
        grid_spec=pltpu.PrefetchScalarGridSpec(
            num_scalar_prefetch=0,
            grid=grid,
            in_specs=[
                pl.BlockSpec((tblk, HW), lambda i: (i, 0)),   # planes
                pl.BlockSpec((1, HW), lambda i: (0, 0)),      # mask_w (constant)
                pl.BlockSpec((1, HW), lambda i: (0, 0)),      # mask_h (constant)
            ],
            out_specs=pl.BlockSpec((1, 8, 128), lambda i: (i, 0, 0)),
        ),
        compiler_params=pltpu.CompilerParams(
            dimension_semantics=("parallel",),   # independent per-block partials
            vmem_limit_bytes=vmem_limit,
        ),
    )(xr, mask_w, mask_h)

    # Tiny wrapper-side finalize: sum the per-block partials (scaling already
    # folded into the masks).
    return jnp.sum(partials[:, 0, 0])


def tv_loss_ref(x, tv_loss_weight=1.0):
    # Pure-JAX reference mirroring the PyTorch forward exactly.
    B, C, H, W = x.shape
    count_h = C * (H - 1) * W
    count_w = C * H * (W - 1)
    h_tv = jnp.sum((x[:, :, 1:, :] - x[:, :, : H - 1, :]) ** 2)
    w_tv = jnp.sum((x[:, :, :, 1:] - x[:, :, :, : W - 1]) ** 2)
    return tv_loss_weight * 2.0 * (h_tv / count_h + w_tv / count_w) / B


if __name__ == "__main__":
    key = jax.random.PRNGKey(0)
    x = jax.random.normal(key, (2, 4, 16, 16), dtype=jnp.float32)

    out = tv_loss(x, tv_loss_weight=1.0)
    out = jax.block_until_ready(out)

    ref = tv_loss_ref(x, tv_loss_weight=1.0)
    assert jnp.allclose(out, ref, rtol=1e-5, atol=1e-5), (out, ref)

    print("KERNEL_OK")
</pallas_src>

<mosaic_0001>
module attributes {stable_mosaic.version = 11 : i64} {
  func.func @_tv_kernel(%arg0: i32, %arg1: memref<8x256xf32, #tpu.memory_space<vmem>>, %arg2: memref<1x256xf32, #tpu.memory_space<vmem>>, %arg3: memref<1x256xf32, #tpu.memory_space<vmem>>, %arg4: memref<1x8x128xf32, #tpu.memory_space<vmem>>) attributes {dimension_semantics = [#tpu.dimension_semantics<parallel>], iteration_bounds = array<i64: 1>, scalar_prefetch = 0 : i64, scratch_operands = 0 : i64, tpu.core_type = #tpu.core_type<tc>, window_params = [{transform_indices = @transform_0, window_bounds = array<i64: 8, 256>}, {pipeline_mode = #tpu.pipeline_mode<synchronous>, transform_indices = @transform_1, window_bounds = array<i64: 1, 256>}, {pipeline_mode = #tpu.pipeline_mode<synchronous>, transform_indices = @transform_2, window_bounds = array<i64: 1, 256>}, {transform_indices = @transform_3, window_bounds = array<i64: 1, 8, 128>}]} {
    %c0 = arith.constant 0 : index
    %c0_0 = arith.constant 0 : index
    %0 = vector.load %arg1[%c0, %c0_0] : memref<8x256xf32, #tpu.memory_space<vmem>>, vector<8x256xf32>
    %c255_i32 = arith.constant 255 : i32
    %1 = tpu.dynamic_rotate %0 by %c255_i32 dim 1 : vector<8x256xf32>, i32 -> vector<8x256xf32>
    %c240_i32 = arith.constant 240 : i32
    %2 = tpu.dynamic_rotate %0 by %c240_i32 dim 1 : vector<8x256xf32>, i32 -> vector<8x256xf32>
    %3 = arith.subf %1, %0 : vector<8x256xf32>
    %4 = arith.subf %2, %0 : vector<8x256xf32>
    %c0_1 = arith.constant 0 : index
    %c0_2 = arith.constant 0 : index
    %5 = vector.load %arg2[%c0_1, %c0_2] : memref<1x256xf32, #tpu.memory_space<vmem>>, vector<1x256xf32>
    %6 = arith.mulf %3, %3 : vector<8x256xf32>
    %7 = vector.broadcast %5 : vector<1x256xf32> to vector<8x256xf32>
    %8 = arith.mulf %7, %6 : vector<8x256xf32>
    %c0_3 = arith.constant 0 : index
    %c0_4 = arith.constant 0 : index
    %9 = vector.load %arg3[%c0_3, %c0_4] : memref<1x256xf32, #tpu.memory_space<vmem>>, vector<1x256xf32>
    %10 = arith.mulf %4, %4 : vector<8x256xf32>
    %11 = vector.broadcast %9 : vector<1x256xf32> to vector<8x256xf32>
    %12 = arith.mulf %11, %10 : vector<8x256xf32>
    %13 = arith.addf %8, %12 : vector<8x256xf32>
    %14 = vector.shape_cast %13 : vector<8x256xf32> to vector<1x8x256xf32>
    %cst = arith.constant dense<0.000000e+00> : vector<1xf32>
    %15 = vector.multi_reduction <add>, %14, %cst [1, 2] : vector<1x8x256xf32> to vector<1xf32>
    %16 = vector.shape_cast %15 : vector<1xf32> to vector<1x1x1xf32>
    %17 = vector.extract %16[0, 0, 0] : f32 from vector<1x1x1xf32>
    %18 = vector.broadcast %17 : f32 to vector<1x8x128xf32>
    %c0_5 = arith.constant 0 : index
    %c0_6 = arith.constant 0 : index
    %c0_7 = arith.constant 0 : index
    %19 = vector.load %arg4[%c0_5, %c0_6, %c0_7] : memref<1x8x128xf32, #tpu.memory_space<vmem>>, vector<1x8x128xf32>
    tpu.vector_store %arg4[%c0_5, %c0_6, %c0_7], %18 {strides = array<i32>} : memref<1x8x128xf32, #tpu.memory_space<vmem>>, vector<1x8x128xf32>,
    return
  }
  func.func @transform_0(%arg0: i32) -> (i32, i32) {
    %c0_i32 = arith.constant 0 : i32
    %c0_i32_0 = arith.constant 0 : i32
    return %arg0, %c0_i32 : i32, i32
  }
  func.func @transform_1(%arg0: i32) -> (i32, i32) {
    %c0_i32 = arith.constant 0 : i32
    %c0_i32_0 = arith.constant 0 : i32
    %c0_i32_1 = arith.constant 0 : i32
    return %c0_i32, %c0_i32_0 : i32, i32
  }
  func.func @transform_2(%arg0: i32) -> (i32, i32) {
    %c0_i32 = arith.constant 0 : i32
    %c0_i32_0 = arith.constant 0 : i32
    %c0_i32_1 = arith.constant 0 : i32
    return %c0_i32, %c0_i32_0 : i32, i32
  }
  func.func @transform_3(%arg0: i32) -> (i32, i32, i32) {
    %c0_i32 = arith.constant 0 : i32
    %c0_i32_0 = arith.constant 0 : i32
    %c0_i32_1 = arith.constant 0 : i32
    return %arg0, %c0_i32, %c0_i32_0 : i32, i32, i32
  }
}

</mosaic_0001>

<bundles_post_ra>
// kernel: tpu_custom_call.1
= control target key start
LH: loop header
LB: loop body
LE: loop exit
PB: predicated region body
PF: predicated region fallthrough
CT: control target
= control target key end

     0   :  { %8 = vsyncpa [#allocation3], 0  ;;  %s233_s0 = inlined_call_operand.hbm [shape: f32[8,256], index: 0, kind: input, shape index: {}]   ;;  %s234_s1 = inlined_call_operand.hbm [shape: f32[1,256], index: 1, kind: input, shape index: {}]   ;;  %s235_s2 = inlined_call_operand.vmem [shape: f32[1,256], index: 2, kind: input, shape index: {}]   ;;  %s236_s3 = inlined_call_operand.hbm [shape: f32[1,8,128], index: 3, kind: output, shape index: {}]  }
   0x1   :  { %9 = vsyncpa [#allocation6], 0 }
   0x2   :  { %10 = vsyncpa [#allocation4], 0  ;;  %s196_s12 = smov [#allocation2]   ;;  %s197_s14 = smov [#allocation5]  }
   0x3   :  { %s17_s13 = sshll.u32 %s196_s12, 4  ;;  %s27_s15 = sshll.u32 %s197_s14, 4  ;;  %s18_s13 = int_to_ptr.vmem [resolvable:$true] %s17_s13  ;;  %s28_s15 = int_to_ptr.vmem [resolvable:$true] %s27_s15 }
   0x4   :  { %s138_s16 = scalar_lea.vmem %s18_s13, 256  ;;  %p143_p1 = scmp.lt.s32.totalorder %s18_s13, %s18_s13 }
   0x5   :  { %p139_p0 = scmp.ne.s32.totalorder %s18_s13, %s138_s16  ;;  %p144_p2 = scmp.lt.s32.totalorder %s138_s16, %s138_s16 }
   0x7   :  { %p145_p3 = por %p144_p2, %p143_p1 }
   0x9   :  { %p146_p4 = pnand %p145_p3, %p139_p0 }
   0xb   :  { %149 = shalt.err (!%p146_p4)
}
   0xc   :  { %20 = dma.hbm_to_vmem [thread:$0]  %s233_s0, 256, %s18_s13, [#allocation3]  }
   0xd   :  { %s158_s19 = scalar_lea.vmem %s28_s15, 32  ;;  %p163_p6 = scmp.lt.s32.totalorder %s28_s15, %s28_s15 }
   0xe   :  { %p159_p5 = scmp.ne.s32.totalorder %s28_s15, %s158_s19  ;;  %p164_p7 = scmp.lt.s32.totalorder %s158_s19, %s158_s19 }
  0x10   :  { %p165_p8 = por %p164_p7, %p163_p6 }
  0x12   :  { %p166_p9 = pnand %p165_p8, %p159_p5 }
  0x14   :  { %169 = shalt.err (!%p166_p9)
}
  0x15   :  { %30 = dma.hbm_to_vmem [thread:$0]  %s234_s1, 32, %s28_s15, [#allocation6]  }
  0x16   :  { %190 = dma.done.wait [#allocation3], 256  }
  0x17   :  { %191 = vsyncadd [#allocation3], 4294967040 }
  0x18   :  { %192 = dma.done.wait [#allocation6], 32  }
  0x19   :  { %193 = vsyncadd [#allocation6], 4294967264  ;;  %v39_v0 = vld [vmem:[#allocation2] sm:$0xff]  ;;  %s198_s22 = smov 112   ;;  %s199_s23 = smov 127   ;;  %v40_v1 = vld [vmem:[#allocation2 + $0x8] sm:$0xff]  ;;  %v45_v2 = vlaneseq }
  0x1a   :  { %50 = vrot.lane.b32.xlu1 %v39_v0, %s198_s22  ;;  %41 = vrot.lane.b32.xlu0 %v39_v0, %s199_s23  ;;  %v77_v9 = vld [vmem:[%s235_s2] sm:$0x3]  ;;  %v61_v10 = vld [vmem:[#allocation5] sm:$0x3]  ;;  %s200_s2 = smov [#allocation7]  }
  0x1b   :  { %v66_v3 = vshrl.u32 %v45_v2, 7  ;;  %v46_v4 = vand.u32 127, %v45_v2  ;;  %s113_s24 = sshll.u32 %s200_s2, 4  ;;  %s114_s24 = int_to_ptr.vmem [resolvable:$true] %s113_s24 }
  0x1c   :  { %s170_s26 = scalar_lea.vmem %s114_s24, 128  ;;  %p175_p11 = scmp.lt.s32.totalorder %s114_s24, %s114_s24 }
  0x1d   :  { %v67_v7 = vsub.s32 0, %v66_v3  ;;  %v71_v8 = vsub.s32 1, %v66_v3  ;;  %vm54_vm0 = vcmp.lt.s32.totalorder %v46_v4, 112  ;;  %vm47_vm1 = vcmp.lt.s32.totalorder %v46_v4, 127  ;;  %p171_p10 = scmp.ne.s32.totalorder %s114_s24, %s170_s26  ;;  %p176_p12 = scmp.lt.s32.totalorder %s170_s26, %s170_s26 }
  0x1e   :  { %52 = vrot.lane.b32.xlu1 %v40_v1, %s198_s22  ;;  %43 = vrot.lane.b32.xlu0 %v40_v1, %s199_s23 }
  0x1f   :  { %v84_v11 = vrot.slane %v77_v9, %v67_v7  ;;  %v88_v12 = vrot.slane %v77_v9, %v71_v8  ;;  %v68_v14 = vrot.slane %v61_v10, %v67_v7  ;;  %v72_v15 = vrot.slane %v61_v10, %v71_v8  ;;  %p177_p13 = por %p176_p12, %p175_p11 }
  0x21   :  { %p178_p0 = pnand %p177_p13, %p171_p10 }
  0x8c   :  { %v51_v5 = vpop.permute.xlu1 %50  ;;  %v42_v6 = vpop.permute.xlu0 %41 }
  0x90   :  { %v53_v13 = vpop.permute.xlu1 %52  ;;  %v44_v16 = vpop.permute.xlu0 %43 }
  0x91   :  { %v55_v17 = vsel %vm54_vm0, %v51_v5, %v53_v13  ;;  %v56_v18 = vsel %vm54_vm0, %v53_v13, %v51_v5  ;;  %v48_v19 = vsel %vm47_vm1, %v42_v6, %v44_v16  ;;  %v49_v20 = vsel %vm47_vm1, %v44_v16, %v42_v6 }
  0x92   :  { %v59_v21 = vsub.f32 %v55_v17, %v39_v0  ;;  %v60_v22 = vsub.f32 %v56_v18, %v40_v1  ;;  %v57_v23 = vsub.f32 %v48_v19, %v39_v0  ;;  %v58_v24 = vsub.f32 %v49_v20, %v40_v1 }
  0x94   :  { %v78_v25 = vmul.f32 %v59_v21, %v59_v21  ;;  %v79_v26 = vmul.f32 %v60_v22, %v60_v22  ;;  %v62_v27 = vmul.f32 %v57_v23, %v57_v23  ;;  %v63_v28 = vmul.f32 %v58_v24, %v58_v24 }
  0x96   :  { %v91_v29 = vmul.f32 %v84_v11, %v78_v25  ;;  %v92_v30 = vmul.f32 %v88_v12, %v79_v26  ;;  %v75_v31 = vmul.f32 %v68_v14, %v62_v27  ;;  %v76_v32 = vmul.f32 %v72_v15, %v63_v28 }
  0x98   :  { %v93_v33 = vadd.f32 %v91_v29, %v75_v31  ;;  %v94_v34 = vadd.f32 %v92_v30, %v76_v32 }
  0x9a   :  { %v95_v35 = vadd.f32 %v94_v34, %v93_v33 }
  0x9c   :  { %96 = vadd.xlane.f32.xlu0 %v95_v35 }
 0x125   :  { %v97_v36 = vpop.xlane.xlu0 %96 }
 0x126   :  { %v98_v37 = vrot.slane %v97_v36, 4 }
 0x128   :  { %v99_v38 = vadd.f32 %v98_v37, %v97_v36 }
 0x12a   :  { %v100_v39 = vrot.slane %v99_v38, 2 }
 0x12c   :  { %v101_v40 = vadd.f32 %v100_v39, %v99_v38 }
 0x12e   :  { %v102_v41 = vrot.slane %v101_v40, 1 }
 0x130   :  { %v103_v42 = vadd.f32 %v102_v41, %v101_v40 }
 0x132   :  { %123 = vpush %v103_v42 }
 0x163   :  { %s124_s25 = spop %123 }
 0x164   :  { %v105_v43 = vstv %s124_s25 }
 0x165   :  { %106 = vst [vmem:[#allocation7] sm:$0xff] %v105_v43 }
 0x166   :  { %181 = shalt.err (!%p178_p0)
}
 0x167   :  { %116 = dma.vmem_to_hbm [thread:$0]  %s114_s24, 128, %s236_s3, [#allocation4]  }
 0x168   :  { %194 = dma.done.wait [#allocation4], 128  }
 0x169   :  { %195 = vsyncadd [#allocation4], 4294967168 }
 0x16a   :  { %120 = vsyncpa [#allocation3], 1 }
 0x16b   :  { %121 = vsyncpa [#allocation6], 1 }
 0x16c   :  { %122 = vsyncpa [#allocation4], 1 }

</bundles_post_ra>
